<compile_context>
chip_gen: v5e
topology: v5e:2x2
jax: 0.10.0
libtpu: 0.0.40
codegen_flags: <defaults>
</compile_context>

<pallas_src>
import functools

import jax
import jax.numpy as jnp
from jax import lax
from jax.experimental import pallas as pl
from jax.experimental.pallas import tpu as pltpu

KSIZE = 7
PAD = 3  # padding = 3 for kernel_size = 7 (matches the PyTorch module)


def _spatial_attention_kernel(m_ref, x_ref, o_ref):
    # m_ref: VMEM (2*HW, HW) bf16 — fused Toeplitz conv matrix: rows [0, HW)
    #        are the "avg" taps (with 1/C folded in), rows [HW, 2*HW) the "max"
    #        taps.  Same block every grid step (stays resident in VMEM).
    # x_ref: VMEM (C, 1, B_TILE, HW) — channel-major input tile.
    # o_ref: VMEM (1, B_TILE, HW)    — sigmoid(conv(cat[avg, max])) tile.
    x = x_ref[...].astype(jnp.float32)          # (C, 1, B_TILE, HW)
    s = jnp.sum(x, axis=(0, 1))                 # (B_TILE, HW); 1/C folded into M
    mx = jnp.max(x, axis=(0, 1))                # (B_TILE, HW) == torch.max(dim=1)

    # Single fused MXU matmul: LHS (B_TILE, 2*HW) bf16 x RHS (2*HW, HW) bf16.
    lhs = jnp.concatenate(
        [s.astype(jnp.bfloat16), mx.astype(jnp.bfloat16)], axis=-1)
    acc = jnp.dot(lhs, m_ref[...], preferred_element_type=jnp.float32)

    o_ref[0] = jax.nn.sigmoid(acc).astype(o_ref.dtype)


def _build_conv_matrix(conv_weight, C, H, W):
    """(1, 2, 7, 7) conv weight -> (2*H*W, H*W) bf16 matrix M such that
    conv2d(cat([avg, max]), w, pad=3).flat == concat([sum_flat, max_flat]) @ M
    (1/C folded into the avg half, so the kernel uses sum instead of mean)."""
    wgt = conv_weight[0].astype(jnp.float32)                        # (2, 7, 7)
    dh = jnp.arange(H)[:, None] - jnp.arange(H)[None, :] + PAD      # (H_in, H_out)
    dw = jnp.arange(W)[:, None] - jnp.arange(W)[None, :] + PAD      # (W_in, W_out)
    vh = (dh >= 0) & (dh < KSIZE)
    vw = (dw >= 0) & (dw < KSIZE)
    dh_c = jnp.clip(dh, 0, KSIZE - 1)
    dw_c = jnp.clip(dw, 0, KSIZE - 1)
    # taps[c, hi, ho, wi, wo] = wgt[c, hi - ho + PAD, wi - wo + PAD]
    taps = wgt[:, dh_c[:, :, None, None], dw_c[None, None, :, :]]   # (2, H, H, W, W)
    mask = (vh[:, :, None, None] & vw[None, None, :, :]).astype(jnp.float32)
    m = taps * mask[None]
    # (c, hi, ho, wi, wo) -> (c, hi, wi, ho, wo) -> (2, H*W, H*W)
    m = m.transpose(0, 1, 3, 2, 4).reshape(2, H * W, H * W)
    m = m.at[0].multiply(1.0 / C)                 # fold 1/C (mean) into avg taps
    # Fuse along K: rows [0,HW) = avg taps, rows [HW,2HW) = max taps.  bf16 for
    # the MXU (accumulation stays f32 in-kernel).
    return m.reshape(2 * H * W, H * W).astype(jnp.bfloat16)


@functools.partial(jax.jit, static_argnames=("b_tile",))
def spatial_attention(x, conv_weight, b_tile=None):
    """x: (B, C, H, W) f32; conv_weight: (1, 2, 7, 7) f32 -> (B, 1, H, W)."""
    B, C, H, W = x.shape
    HW = H * W

    if b_tile is None:
        # Feed the MXU: matmul M-dim up to 128, but keep >= 2 "parallel" grid
        # steps whenever B >= 2 (v7x has two TensorCores).
        b_tile = min(128, pl.cdiv(B, 2)) if B >= 2 else 1
        if b_tile >= 8:
            b_tile = ((b_tile + 7) // 8) * 8      # sublane-dense output stores
    b_tile = max(1, min(b_tile, B))
    grid = pl.cdiv(B, b_tile)
    b_pad = grid * b_tile

    # Fused bf16 Toeplitz conv matrix: (2*HW, HW), ~2*HW^2*2 bytes.
    m = _build_conv_matrix(conv_weight, C, H, W)

    # Channel-major layout (C, grid, b_tile, HW): leading-axis channel reduce
    # and a sublane/lane-dense (b_tile, HW) minor tile per grid step.
    x_flat = x.reshape(B, C, HW)
    if b_pad != B:
        x_flat = jnp.pad(x_flat, ((0, b_pad - B), (0, 0), (0, 0)))
    x_cm = x_flat.transpose(1, 0, 2).reshape(C, grid, b_tile, HW)

    # Explicit VMEM budget (v5e scoped default is only 16 MiB).
    m_bytes = (2 * HW) * HW * 2
    x_tile_bytes = C * b_tile * HW * x.dtype.itemsize
    o_tile_bytes = b_tile * HW * x.dtype.itemsize
    vmem_limit = int(min(
        64 << 20,
        max(32 << 20, 2 * (m_bytes + x_tile_bytes + o_tile_bytes) + (4 << 20))))

    grid_spec = pltpu.PrefetchScalarGridSpec(
        num_scalar_prefetch=0,
        grid=(grid,),
        in_specs=[
            # Fused conv matrix: same block every step -> resident in VMEM.
            pl.BlockSpec((2 * HW, HW), lambda b: (0, 0)),
            # One channel-major batch tile.
            pl.BlockSpec((C, 1, b_tile, HW), lambda b: (0, b, 0, 0)),
        ],
        out_specs=pl.BlockSpec((1, b_tile, HW), lambda b: (b, 0, 0)),
    )

    out = pl.pallas_call(
        _spatial_attention_kernel,
        out_shape=jax.ShapeDtypeStruct((grid, b_tile, HW), x.dtype),
        grid_spec=grid_spec,
        compiler_params=pltpu.CompilerParams(
            dimension_semantics=("parallel",),
            vmem_limit_bytes=vmem_limit),
    )(m, x_cm)

    return out.reshape(b_pad, HW)[:B].reshape(B, 1, H, W)


if __name__ == "__main__":
    key = jax.random.PRNGKey(0)
    kx, kw = jax.random.split(key)

    B, C, H, W = 2, 4, 16, 16
    x = jax.random.normal(kx, (B, C, H, W), dtype=jnp.float32)

    # Deterministic conv weight init (Conv2d(2, 1, 7, bias=False) -> (1, 2, 7, 7)),
    # kaiming-uniform-like bound, no checkpoint loading.
    fan_in = 2 * KSIZE * KSIZE
    bound = 1.0 / (fan_in ** 0.5)
    conv_w = jax.random.uniform(kw, (1, 2, KSIZE, KSIZE), dtype=jnp.float32,
                                minval=-bound, maxval=bound)

    out = jax.block_until_ready(spatial_attention(x, conv_w))

    # Pure-JAX reference (same semantics as the PyTorch forward).
    avg = jnp.mean(x, axis=1, keepdims=True)
    mx = jnp.max(x, axis=1, keepdims=True)
    cat = jnp.concatenate([avg, mx], axis=1)
    ref = jax.nn.sigmoid(lax.conv_general_dilated(
        cat, conv_w, window_strides=(1, 1), padding=((PAD, PAD), (PAD, PAD)),
        dimension_numbers=("NCHW", "OIHW", "NCHW"),
        precision=lax.Precision.HIGHEST))

    assert out.shape == (B, 1, H, W)
    # Tolerance covers bf16 MXU operands (weights + reduced activations) vs.
    # the f32 conv reference; output is post-sigmoid so errors stay ~1e-3.
    max_err = float(jnp.max(jnp.abs(out - ref)))
    assert jnp.allclose(out, ref, atol=5e-3, rtol=0.0), (
        f"kernel/reference mismatch, max abs err = {max_err}")
    print("KERNEL_OK")
</pallas_src>

<mosaic_0001>
module attributes {stable_mosaic.version = 11 : i64} {
  func.func @_spatial_attention_kernel(%arg0: i32, %arg1: memref<512x256xbf16, #tpu.memory_space<vmem>>, %arg2: memref<4x1x1x256xf32, #tpu.memory_space<vmem>>, %arg3: memref<1x1x256xf32, #tpu.memory_space<vmem>>) attributes {dimension_semantics = [#tpu.dimension_semantics<parallel>], iteration_bounds = array<i64: 2>, scalar_prefetch = 0 : i64, scratch_operands = 0 : i64, tpu.core_type = #tpu.core_type<tc>, window_params = [{pipeline_mode = #tpu.pipeline_mode<synchronous>, transform_indices = @transform_0, window_bounds = array<i64: 512, 256>}, {transform_indices = @transform_1, window_bounds = array<i64: 4, 1, 1, 256>}, {transform_indices = @transform_2, window_bounds = array<i64: 1, 1, 256>}]} {
    %c0 = arith.constant 0 : index
    %c0_0 = arith.constant 0 : index
    %c0_1 = arith.constant 0 : index
    %c0_2 = arith.constant 0 : index
    %0 = vector.load %arg2[%c0, %c0_0, %c0_1, %c0_2] : memref<4x1x1x256xf32, #tpu.memory_space<vmem>>, vector<4x1x1x256xf32>
    %cst = arith.constant dense<0.000000e+00> : vector<1x256xf32>
    %1 = vector.multi_reduction <add>, %0, %cst [0, 1] : vector<4x1x1x256xf32> to vector<1x256xf32>
    %cst_3 = arith.constant dense<0xFF800000> : vector<1x256xf32>
    %2 = vector.multi_reduction <maximumf>, %0, %cst_3 [0, 1] : vector<4x1x1x256xf32> to vector<1x256xf32>
    %3 = arith.truncf %1 : vector<1x256xf32> to vector<1x256xbf16>
    %4 = arith.truncf %2 : vector<1x256xf32> to vector<1x256xbf16>
    %5 = tpu.concatenate %3, %4 in 1 : vector<1x256xbf16>, vector<1x256xbf16> -> vector<1x512xbf16>
    %c0_4 = arith.constant 0 : index
    %c0_5 = arith.constant 0 : index
    %6 = vector.load %arg1[%c0_4, %c0_5] : memref<512x256xbf16, #tpu.memory_space<vmem>>, vector<512x256xbf16>
    %cst_6 = arith.constant dense<0.000000e+00> : vector<1x256xf32>
    %7 = tpu.matmul %5, %6, %cst_6 {dimension_numbers = #tpu.dot_dimension_numbers<[1], [0], [0], [1], [0, 0, 1, 1], [], []>} : vector<1x512xbf16>, vector<512x256xbf16>, vector<1x256xf32> -> vector<1x256xf32>
    %8 = arith.negf %7 : vector<1x256xf32>
    %9 = math.exp %8 : vector<1x256xf32>
    %cst_7 = arith.constant 1.000000e+00 : f32
    %10 = vector.broadcast %cst_7 : f32 to vector<1x256xf32>
    %11 = arith.addf %10, %9 : vector<1x256xf32>
    %12 = arith.divf %10, %11 : vector<1x256xf32>
    %c0_8 = arith.constant 0 : index
    %c0_9 = arith.constant 0 : index
    %c0_10 = arith.constant 0 : index
    %13 = vector.load %arg3[%c0_8, %c0_9, %c0_10] : memref<1x1x256xf32, #tpu.memory_space<vmem>>, vector<1x1x256xf32>
    %14 = vector.shape_cast %13 : vector<1x1x256xf32> to vector<1x256xf32>
    %15 = vector.shape_cast %12 : vector<1x256xf32> to vector<1x1x256xf32>
    tpu.vector_store %arg3[%c0_8, %c0_9, %c0_10], %15 {strides = array<i32>} : memref<1x1x256xf32, #tpu.memory_space<vmem>>, vector<1x1x256xf32>,
    return
  }
  func.func @transform_0(%arg0: i32) -> (i32, i32) {
    %c0_i32 = arith.constant 0 : i32
    %c0_i32_0 = arith.constant 0 : i32
    %c0_i32_1 = arith.constant 0 : i32
    return %c0_i32, %c0_i32_0 : i32, i32
  }
  func.func @transform_1(%arg0: i32) -> (i32, i32, i32, i32) {
    %c0_i32 = arith.constant 0 : i32
    %c0_i32_0 = arith.constant 0 : i32
    %c0_i32_1 = arith.constant 0 : i32
    %c0_i32_2 = arith.constant 0 : i32
    return %c0_i32, %arg0, %c0_i32_0, %c0_i32_1 : i32, i32, i32, i32
  }
  func.func @transform_2(%arg0: i32) -> (i32, i32, i32) {
    %c0_i32 = arith.constant 0 : i32
    %c0_i32_0 = arith.constant 0 : i32
    %c0_i32_1 = arith.constant 0 : i32
    return %arg0, %c0_i32, %c0_i32_0 : i32, i32, i32
  }
}

</mosaic_0001>

<bundles_post_ra>
// kernel: spatial_attention.1
= control target key start
LH: loop header
LB: loop body
LE: loop exit
PB: predicated region body
PF: predicated region fallthrough
CT: control target
= control target key end

     0   :  { %s1263_s9 = smov 0   ;;  %s1265_s10 = smov 0   ;;  %s1806_s0 = inlined_call_operand.vmem [shape: bf16[512,256], index: 0, kind: input, shape index: {}]   ;;  %s1807_s1 = inlined_call_operand.vmem [shape: f32[4,2,1,256], index: 1, kind: input, shape index: {}]   ;;  %s1808_s2 = inlined_call_operand.vmem [shape: f32[2,1,256], index: 2, kind: output, shape index: {}]  }
   0x1   :  { %s1267_s11 = smov 0  }
   0x2 LB: > { %s859_s12 = sadd.s32 4294967295, %s1246_s11   ;;  %s1280_s13 = sadd.s32 1, %s1246_s11   ;;  %s1246_s11 = sphi %s1267_s11, %s1813_s11   ;;  %s1242_s10 = sphi %s1265_s10, %s1812_s10   ;;  %s1238_s9 = sphi %s1263_s9, %s1811_s9  }
   0x3   : > { %s37_s14 = ssub.s32 %s1246_s11, %s1280_s13  ;;  %s40_s15 = sadd.s32 1, %s1242_s10 }
   0x4   : > { %p38_p0 = scmp.eq.s32.totalorder %s37_s14, 0  ;;  %p47_p1 = scmp.ne.s32.totalorder %s1242_s10, %s1238_s9 }
   0x5   : > { %p48_p2 = scmp.eq.s32.totalorder %s1246_s11, 0  ;;  %p862_p4 = scmp.ge.s32.totalorder %s1246_s11, 2 }
   0x6   : > { %s1289_s16 = scalar_select %p38_p0, %s1242_s10, %s40_s15  }
   0x7   : > { %p49_p3 = por %p48_p2, %p47_p1  ;;  %102 = sbr.rel (%p862_p4) target bundleno = 20 (0x14), region = 20 }
   0xc   : > { %105 = sbr.rel (!%p49_p3) target bundleno = 20 (0x14), region = 24  ;;  %s107_s17 = sand.u32 (%p49_p3), 1, %s1242_s10  }
   0xd   : > { %s864_s18 = sshll.u32 (%p49_p3), %s1246_s11, 1  ;;  %s863_s19 = sshll.u32 (%p49_p3), %s107_s17, 3 }
   0xe   : > { %s111_s22 = scalar_lea.vmem (%p49_p3), %s1807_s1, %s864_s18  ;;  %s109_s23 = scalar_lea.vmem (%p49_p3), [#allocation2], %s863_s19 }
   0xf   : > { %v128_v0 = vld [vmem:[%s111_s22] sm:$0x3] (%p49_p3)  ;;  %v130_v1 = vld [vmem:[%s111_s22 + $0x4] sm:$0x3] (%p49_p3)  ;;  %v132_v2 = vld [vmem:[%s111_s22 + $0x8] sm:$0x3] (%p49_p3) }
  0x10   : > { %129 = vst [vmem:[%s109_s23] sm:$0x3] (%p49_p3), %v128_v0  ;;  %v134_v3 = vld [vmem:[%s111_s22 + $0xc] sm:$0x3] (%p49_p3) }
  0x11   : > { %131 = vst [vmem:[%s109_s23 + $0x2] sm:$0x3] %v130_v1 }
  0x12   : > { %133 = vst [vmem:[%s109_s23 + $0x4] sm:$0x3] %v132_v2 }
  0x13   : > { %135 = vst [vmem:[%s109_s23 + $0x6] sm:$0x3] %v134_v3 }
  0x14 PF: > { %p865_p5 = scmp.ge.s32.totalorder %s1246_s11, 1  ;;  %p166_p6 = scmp.lt.s32.totalorder %s1246_s11, 3 }
  0x16   : > { %p167_p7 = pnand %p865_p5, %p166_p6 }
  0x17   : > { %s173_s8 = sand.u32 (!%p167_p7), 1, %s1238_s9   ;;  %p193_p8 = scmp.lt.s32.totalorder (!%p167_p7), %s859_s12, 1 }
  0x18   : > { %170 = sbr.rel (%p167_p7) target bundleno = 265 (0x109), region = 65  ;;  %s866_s19 = sshll.u32 (!%p167_p7), %s173_s8, 3 }
  0x19   : > { %s175_s27 = scalar_lea.vmem (!%p167_p7), [#allocation2], %s866_s19 }
  0x1d   : > { %v926_v4 = vld [vmem:[%s1806_s0 + $0x70] sm:$0xf]  ;;  %v1143_v5 = vld [vmem:[%s1806_s0 + $0x74] sm:$0xf0]  ;;  %v918_v15 = vld [vmem:[%s1806_s0 + $0x60] sm:$0xf] }
  0x1e   : > { %v990_v6 = vld [vmem:[%s1806_s0 + $0xf0] sm:$0xf]  ;;  %v927_v7 = vor.u32 %v1143_v5, %v926_v4  ;;  %v1159_v8 = vld [vmem:[%s1806_s0 + $0xf4] sm:$0xf0]  ;;  %v1141_v17 = vld [vmem:[%s1806_s0 + $0x64] sm:$0xf0] }
  0x1f   : > { %v1054_v9 = vld [vmem:[%s1806_s0 + $0x170] sm:$0xf]  ;;  %v1175_v10 = vld [vmem:[%s1806_s0 + $0x174] sm:$0xf0]  ;;  %v991_v11 = vor.u32 %v1159_v8, %v990_v6  ;;  %v982_v18 = vld [vmem:[%s1806_s0 + $0xe0] sm:$0xf]  ;;  %v919_v20 = vor.u32 %v1141_v17, %v918_v15 }
  0x20   : > { %v1055_v12 = vor.u32 %v1175_v10, %v1054_v9  ;;  %v1118_v13 = vld [vmem:[%s1806_s0 + $0x1f0] sm:$0xf]  ;;  %v1191_v14 = vld [vmem:[%s1806_s0 + $0x1f4] sm:$0xf0]  ;;  %652 = vmatpush.bf16.msra.mxu0 %v927_v7  ;;  %v1157_v19 = vld [vmem:[%s1806_s0 + $0xe4] sm:$0xf0] }
  0x21   : > { %v1119_v16 = vor.u32 %v1191_v14, %v1118_v13  ;;  %665 = vmatpush.bf16.msra.mxu1 %v991_v11  ;;  %v983_v21 = vor.u32 %v1157_v19, %v982_v18  ;;  %v1046_v22 = vld [vmem:[%s1806_s0 + $0x160] sm:$0xf]  ;;  %v1173_v23 = vld [vmem:[%s1806_s0 + $0x164] sm:$0xf0]  ;;  %v910_v27 = vld [vmem:[%s1806_s0 + $0x50] sm:$0xf] }
  0x22   : > { %678 = vmatpush.bf16.msra.mxu2 %v1055_v12  ;;  %v1110_v24 = vld [vmem:[%s1806_s0 + $0x1e0] sm:$0xf]  ;;  %v1047_v25 = vor.u32 %v1173_v23, %v1046_v22  ;;  %v1189_v26 = vld [vmem:[%s1806_s0 + $0x1e4] sm:$0xf0]  ;;  %v1139_v28 = vld [vmem:[%s1806_s0 + $0x54] sm:$0xf0] }
  0x23   : > { %691 = vmatpush.bf16.msra.mxu3 %v1119_v16  ;;  %v1111_v29 = vor.u32 %v1189_v26, %v1110_v24  ;;  %v974_v30 = vld [vmem:[%s1806_s0 + $0xd0] sm:$0xf]  ;;  %v1155_v31 = vld [vmem:[%s1806_s0 + $0xd4] sm:$0xf0]  ;;  %v911_v33 = vor.u32 %v1139_v28, %v910_v27  ;;  %v902_v39 = vld [vmem:[%s1806_s0 + $0x40] sm:$0xf] }
  0x24   : > { %v1038_v32 = vld [vmem:[%s1806_s0 + $0x150] sm:$0xf]  ;;  %653 = vmatpush.bf16.msra.mxu0 %v919_v20  ;;  %v1171_v34 = vld [vmem:[%s1806_s0 + $0x154] sm:$0xf0]  ;;  %v975_v37 = vor.u32 %v1155_v31, %v974_v30  ;;  %v1137_v40 = vld [vmem:[%s1806_s0 + $0x44] sm:$0xf0]  ;;  %v236_v30 = vlaneseq }
  0x25   : > { %v1102_v35 = vld [vmem:[%s1806_s0 + $0x1d0] sm:$0xf]  ;;  %v1187_v36 = vld [vmem:[%s1806_s0 + $0x1d4] sm:$0xf0]  ;;  %666 = vmatpush.bf16.msra.mxu1 %v983_v21  ;;  %v1039_v38 = vor.u32 %v1171_v34, %v1038_v32  ;;  %v966_v41 = vld [vmem:[%s1806_s0 + $0xc0] sm:$0xf]  ;;  %v903_v48 = vor.u32 %v1137_v40, %v902_v39 }
  0x26   : > { %679 = vmatpush.bf16.msra.mxu2 %v1047_v25  ;;  %v1103_v42 = vor.u32 %v1187_v36, %v1102_v35  ;;  %v1153_v43 = vld [vmem:[%s1806_s0 + $0xc4] sm:$0xf0]  ;;  %v1030_v44 = vld [vmem:[%s1806_s0 + $0x140] sm:$0xf]  ;;  %v894_v51 = vld [vmem:[%s1806_s0 + $0x30] sm:$0xf] }
  0x27   : > { %692 = vmatpush.bf16.msra.mxu3 %v1111_v29  ;;  %v1169_v45 = vld [vmem:[%s1806_s0 + $0x144] sm:$0xf0]  ;;  %v1094_v46 = vld [vmem:[%s1806_s0 + $0x1c0] sm:$0xf]  ;;  %v967_v49 = vor.u32 %v1153_v43, %v966_v41  ;;  %v1135_v52 = vld [vmem:[%s1806_s0 + $0x34] sm:$0xf0] }
  0x28   : > { %v1185_v47 = vld [vmem:[%s1806_s0 + $0x1c4] sm:$0xf0]  ;;  %654 = vmatpush.bf16.msra.mxu0 %v911_v33  ;;  %v1031_v50 = vor.u32 %v1169_v45, %v1030_v44  ;;  %v958_v53 = vld [vmem:[%s1806_s0 + $0xb0] sm:$0xf]  ;;  %v1151_v55 = vld [vmem:[%s1806_s0 + $0xb4] sm:$0xf0]  ;;  %v895_v60 = vor.u32 %v1135_v52, %v894_v51 }
  0x29   : > { %667 = vmatpush.bf16.msra.mxu1 %v975_v37  ;;  %v1095_v54 = vor.u32 %v1185_v47, %v1094_v46  ;;  %v1022_v56 = vld [vmem:[%s1806_s0 + $0x130] sm:$0xf]  ;;  %v1167_v57 = vld [vmem:[%s1806_s0 + $0x134] sm:$0xf0]  ;;  %v886_v61 = vld [vmem:[%s1806_s0 + $0x20] sm:$0xf]  ;;  %v959_v62 = vor.u32 %v1151_v55, %v958_v53 }
  0x2a   : > { %680 = vmatpush.bf16.msra.mxu2 %v1039_v38  ;;  %v1086_v58 = vld [vmem:[%s1806_s0 + $0x1b0] sm:$0xf]  ;;  %v1183_v59 = vld [vmem:[%s1806_s0 + $0x1b4] sm:$0xf0]  ;;  %v1023_v63 = vor.u32 %v1167_v57, %v1022_v56  ;;  %v1133_v0 = vld [vmem:[%s1806_s0 + $0x24] sm:$0xf0] }
  0x2b   : > { %693 = vmatpush.bf16.msra.mxu3 %v1103_v42  ;;  %v950_v1 = vld [vmem:[%s1806_s0 + $0xa0] sm:$0xf]  ;;  %v1149_v2 = vld [vmem:[%s1806_s0 + $0xa4] sm:$0xf0]  ;;  %v1087_v3 = vor.u32 %v1183_v59, %v1086_v58  ;;  %v878_v8 = vld [vmem:[%s1806_s0 + $0x10] sm:$0xf]  ;;  %v887_v10 = vor.u32 %v1133_v0, %v886_v61 }
  0x2c   : > { %655 = vmatpush.bf16.msra.mxu0 %v903_v48  ;;  %v1014_v4 = vld [vmem:[%s1806_s0 + $0x120] sm:$0xf]  ;;  %v1165_v5 = vld [vmem:[%s1806_s0 + $0x124] sm:$0xf0]  ;;  %v1131_v9 = vld [vmem:[%s1806_s0 + $0x14] sm:$0xf0]  ;;  %v951_v15 = vor.u32 %v1149_v2, %v950_v1 }
  0x2d   : > { %668 = vmatpush.bf16.msra.mxu1 %v967_v49  ;;  %v1078_v6 = vld [vmem:[%s1806_s0 + $0x1a0] sm:$0xf]  ;;  %v1181_v7 = vld [vmem:[%s1806_s0 + $0x1a4] sm:$0xf0]  ;;  %v942_v11 = vld [vmem:[%s1806_s0 + $0x90] sm:$0xf]  ;;  %v1015_v16 = vor.u32 %v1165_v5, %v1014_v4  ;;  %v879_v34 = vor.u32 %v1131_v9, %v878_v8 }
  0x2e   : > { %681 = vmatpush.bf16.msra.mxu2 %v1031_v50  ;;  %v1147_v12 = vld [vmem:[%s1806_s0 + $0x94] sm:$0xf0]  ;;  %v1006_v13 = vld [vmem:[%s1806_s0 + $0x110] sm:$0xf]  ;;  %v1470_v19 = vld [vmem:[%s1806_s0] sm:$0xf]  ;;  %v1079_v23 = vor.u32 %v1181_v7, %v1078_v6 }
  0x2f   : > { %694 = vmatpush.bf16.msra.mxu3 %v1095_v54  ;;  %v1163_v14 = vld [vmem:[%s1806_s0 + $0x114] sm:$0xf0]  ;;  %v1070_v17 = vld [vmem:[%s1806_s0 + $0x190] sm:$0xf]  ;;  %v1475_v20 = vld [vmem:[%s1806_s0 + $0x4] sm:$0xf0]  ;;  %v943_v38 = vor.u32 %v1147_v12, %v942_v11 }
  0x30   : > { %656 = vmatpush.bf16.msra.mxu0 %v895_v60  ;;  %v1179_v18 = vld [vmem:[%s1806_s0 + $0x194] sm:$0xf0]  ;;  %v1480_v21 = vld [vmem:[%s1806_s0 + $0x80] sm:$0xf]  ;;  %v1485_v22 = vld [vmem:[%s1806_s0 + $0x84] sm:$0xf0]  ;;  %v1007_v39 = vor.u32 %v1163_v14, %v1006_v13  ;;  %v871_v43 = vor.u32 %v1475_v20, %v1470_v19 }
  0x31   : > { %669 = vmatpush.bf16.msra.mxu1 %v959_v62  ;;  %v1490_v24 = vld [vmem:[%s1806_s0 + $0x100] sm:$0xf]  ;;  %v1495_v25 = vld [vmem:[%s1806_s0 + $0x104] sm:$0xf0]  ;;  %v1510_v28 = vld [vmem:[%s1806_s0 + $0x74] sm:$0xf]  ;;  %v1071_v42 = vor.u32 %v1179_v18, %v1070_v17  ;;  %v935_v44 = vor.u32 %v1485_v22, %v1480_v21 }
  0x32   : > { %682 = vmatpush.bf16.msra.mxu2 %v1023_v63  ;;  %v1500_v26 = vld [vmem:[%s1806_s0 + $0x180] sm:$0xf]  ;;  %v1505_v27 = vld [vmem:[%s1806_s0 + $0x184] sm:$0xf0]  ;;  %v1515_v29 = vld [vmem:[%s1806_s0 + $0x78] sm:$0xf0]  ;;  %v999_v48 = vor.u32 %v1495_v25, %v1490_v24 }
  0x33   : > { %695 = vmatpush.bf16.msra.mxu3 %v1087_v3  ;;  %v1520_v31 = vld [vmem:[%s1806_s0 + $0xf4] sm:$0xf]  ;;  %v1525_v32 = vld [vmem:[%s1806_s0 + $0xf8] sm:$0xf0]  ;;  %v1551_v40 = vld [vmem:[%s1806_s0 + $0x64] sm:$0xf]  ;;  %v1063_v49 = vor.u32 %v1505_v27, %v1500_v26  ;;  %v931_v50 = vor.u32 %v1510_v28, %v1515_v29 }
  0x34   : > { %v1530_v33 = vld [vmem:[%s1806_s0 + $0x174] sm:$0xf]  ;;  %657 = vmatpush.bf16.msra.mxu0 %v887_v10  ;;  %v1535_v35 = vld [vmem:[%s1806_s0 + $0x178] sm:$0xf0]  ;;  %v1556_v41 = vld [vmem:[%s1806_s0 + $0x68] sm:$0xf0]  ;;  %v995_v53 = vor.u32 %v1520_v31, %v1525_v32 }
  0x35   : > { %v1540_v36 = vld [vmem:[%s1806_s0 + $0x1f4] sm:$0xf]  ;;  %v1545_v37 = vld [vmem:[%s1806_s0 + $0x1f8] sm:$0xf0]  ;;  %670 = vmatpush.bf16.msra.mxu1 %v951_v15  ;;  %vm1562_vm0 = vcmp.lt.s32.totalorder %v236_v30, 256  ;;  %vm221_vm1 = vcmask 1040384   ;;  %v1059_v54 = vor.u32 %v1530_v33, %v1535_v35  ;;  %v923_v59 = vor.u32 %v1551_v40, %v1556_v41 }
  0x36   : > { %683 = vmatpush.bf16.msra.mxu2 %v1015_v16  ;;  %v1569_v46 = vld [vmem:[%s1806_s0 + $0xe4] sm:$0xf]  ;;  %v1574_v47 = vld [vmem:[%s1806_s0 + $0xe8] sm:$0xf0]  ;;  %v1123_v55 = vor.u32 %v1540_v36, %v1545_v37  ;;  %v197_v56 = vld [vmem:[%s175_s27] sm:$0x3] }
  0x37   : > { %696 = vmatpush.bf16.msra.mxu3 %v1079_v23  ;;  %v1585_v51 = vld [vmem:[%s1806_s0 + $0x164] sm:$0xf]  ;;  %v1590_v52 = vld [vmem:[%s1806_s0 + $0x168] sm:$0xf0]  ;;  %v198_v57 = vld [vmem:[%s175_s27 + $0x2] sm:$0x3]  ;;  %v987_v3 = vor.u32 %v1569_v46, %v1574_v47 }
  0x38   : > { %658 = vmatpush.bf16.msra.mxu0 %v879_v34  ;;  %v199_v58 = vld [vmem:[%s175_s27 + $0x4] sm:$0x3]  ;;  %v200_v60 = vld [vmem:[%s175_s27 + $0x6] sm:$0x3]  ;;  %v240_v61 = vsel %vm1562_vm0, %v197_v56, -inf  ;;  %v241_v62 = vsel %vm1562_vm0, %v198_v57, -inf  ;;  %v1051_v6 = vor.u32 %v1585_v51, %v1590_v52 }
  0x39   : > { %671 = vmatpush.bf16.msra.mxu1 %v943_v38  ;;  %v242_v63 = vsel %vm1562_vm0, %v199_v58, -inf  ;;  %v205_v0 = vperm.slane %v197_v56, 0  ;;  %v243_v1 = vsel %vm1562_vm0, %v200_v60, -inf  ;;  %v244_v2 = vmax.f32 %v240_v61, %v241_v62  ;;  %v1188_v9 = vld [vmem:[%s1806_s0 + $0x1e4] sm:$0xf]  ;;  %s1815_s12 = smov (!%p193_p8, %s859_s12), 1 }
  0x3a   : > { %684 = vmatpush.bf16.msra.mxu2 %v1007_v39  ;;  %v206_v4 = vperm.slane %v197_v56, 1  ;;  %v245_v5 = vmax.f32 %v242_v63, %v243_v1  ;;  %v207_v7 = vperm.slane %v198_v57, 0  ;;  %v208_v8 = vperm.slane %v198_v57, 1  ;;  %v1112_v15 = vld [vmem:[%s1806_s0 + $0x1e8] sm:$0xf0]  ;;  %s867_s8 = sshll.u32 %s1815_s12, 1 }
  0x3b   : > { %697 = vmatpush.bf16.msra.mxu3 %v1071_v42  ;;  %v209_v10 = vperm.slane %v199_v58, 0  ;;  %v210_v11 = vperm.slane %v199_v58, 1  ;;  %v211_v12 = vperm.slane %v200_v60, 0  ;;  %v212_v13 = vperm.slane %v200_v60, 1  ;;  %v1138_v23 = vld [vmem:[%s1806_s0 + $0x54] sm:$0xf]  ;;  %s196_s15 = scalar_lea.vmem %s1808_s2, %s867_s8 }
  0x3c   : > { %659 = vmatpush.bf16.msra.mxu0 %v871_v43  ;;  %v246_v14 = vmax.f32 %v244_v2, %v245_v5  ;;  %v222_v16 = vsel %vm221_vm1, %v205_v0, 0.0  ;;  %v223_v17 = vsel %vm221_vm1, %v207_v7, 0.0  ;;  %v229_v18 = vsel %vm221_vm1, %v206_v4, 0.0  ;;  %v912_v28 = vld [vmem:[%s1806_s0 + $0x58] sm:$0xf0] }
  0x3d   : > { %672 = vmatpush.bf16.msra.mxu1 %v935_v44  ;;  %v224_v19 = vadd.f32 %v223_v17, %v222_v16  ;;  %v225_v20 = vsel %vm221_vm1, %v209_v10, 0.0  ;;  %v227_v21 = vsel %vm221_vm1, %v211_v12, 0.0  ;;  %v230_v22 = vsel %vm221_vm1, %v208_v8, 0.0  ;;  %v1154_v32 = vld [vmem:[%s1806_s0 + $0xd4] sm:$0xf] }
  0x3e   : > { %685 = vmatpush.bf16.msra.mxu2 %v999_v48  ;;  %v249_v24 = vperm.slane %v246_v14, 0  ;;  %v250_v25 = vperm.slane %v246_v14, 1  ;;  %v231_v26 = vadd.f32 %v230_v22, %v229_v18  ;;  %v232_v27 = vsel %vm221_vm1, %v210_v11, 0.0  ;;  %v976_v35 = vld [vmem:[%s1806_s0 + $0xd8] sm:$0xf0] }
  0x3f   : > { %698 = vmatpush.bf16.msra.mxu3 %v1063_v49  ;;  %v1115_v29 = vor.u32 %v1188_v9, %v1112_v15  ;;  %v226_v30 = vadd.f32 %v225_v20, %v224_v19  ;;  %v234_v31 = vsel %vm221_vm1, %v212_v13, 0.0  ;;  %v1170_v36 = vld [vmem:[%s1806_s0 + $0x154] sm:$0xf]  ;;  %v1040_v37 = vld [vmem:[%s1806_s0 + $0x158] sm:$0xf0]  ;;  %v915_v39 = vor.u32 %v1138_v23, %v912_v28 }
  0x40   : > { %704 = vmatpush.bf16.msrb.mxu0 %v931_v50  ;;  %v253_v33 = vpack.c.bf16 %v250_v25, %v249_v24  ;;  %v233_v34 = vadd.f32 %v232_v27, %v231_v26  ;;  %v1186_v40 = vld [vmem:[%s1806_s0 + $0x1d4] sm:$0xf]  ;;  %v1104_v41 = vld [vmem:[%s1806_s0 + $0x1d8] sm:$0xf0]  ;;  %v1136_v46 = vld [vmem:[%s1806_s0 + $0x44] sm:$0xf]  ;;  %v979_v48 = vor.u32 %v1154_v32, %v976_v35  ;;  %v1043_v49 = vor.u32 %v1170_v36, %v1040_v37 }
  0x41   : > { %717 = vmatpush.bf16.msrb.mxu1 %v995_v53  ;;  %v228_v38 = vadd.f32 %v227_v21, %v226_v30  ;;  %v904_v47 = vld [vmem:[%s1806_s0 + $0x48] sm:$0xf0]  ;;  %v1152_v50 = vld [vmem:[%s1806_s0 + $0xc4] sm:$0xf]  ;;  %v1134_v63 = vld [vmem:[%s1806_s0 + $0x34] sm:$0xf] }
  0x42   : > { %730 = vmatpush.bf16.msrb.mxu2 %v1059_v54  ;;  %v262_v42 = vunpack.c.l.b16 %v253_v33  ;;  %v263_v43 = vunpack.c.h.b16 %v253_v33  ;;  %v235_v44 = vadd.f32 %v234_v31, %v233_v34  ;;  %v1107_v54 = vor.u32 %v1186_v40, %v1104_v41  ;;  %v1168_v56 = vld [vmem:[%s1806_s0 + $0x144] sm:$0xf]  ;;  %v1032_v57 = vld [vmem:[%s1806_s0 + $0x148] sm:$0xf0]  ;;  %v896_v0 = vld [vmem:[%s1806_s0 + $0x38] sm:$0xf0] }
  0x43   : > { %743 = vmatpush.bf16.msrb.mxu3 %v1123_v55  ;;  %v968_v55 = vld [vmem:[%s1806_s0 + $0xc8] sm:$0xf0]  ;;  %v907_v58 = vor.u32 %v1136_v46, %v904_v47  ;;  %v1035_v2 = vor.u32 %v1168_v56, %v1032_v57  ;;  %v960_v7 = vld [vmem:[%s1806_s0 + $0xb8] sm:$0xf0]  ;;  %v1166_v8 = vld [vmem:[%s1806_s0 + $0x134] sm:$0xf]  ;;  %v899_v10 = vor.u32 %v1134_v63, %v896_v0 }
  0x44   : > { %705 = vmatpush.bf16.msrb.mxu0 %v923_v59  ;;  %v1659_v51 = vpack.c.b16 %v262_v42, %v262_v42  ;;  %v1661_v52 = vpack.c.b16 %v263_v43, %v263_v43  ;;  %v247_v53 = vpack.c.bf16 %v235_v44, %v228_v38  ;;  %v1184_v59 = vld [vmem:[%s1806_s0 + $0x1c4] sm:$0xf]  ;;  %v1096_v60 = vld [vmem:[%s1806_s0 + $0x1c8] sm:$0xf0]  ;;  %v971_v1 = vor.u32 %v1152_v50, %v968_v55  ;;  %v1024_v9 = vld [vmem:[%s1806_s0 + $0x138] sm:$0xf0] }
  0x45   : > { %718 = vmatpush.bf16.msrb.mxu1 %v987_v3  ;;  %v1150_v3 = vld [vmem:[%s1806_s0 + $0xb4] sm:$0xf]  ;;  %v1088_v12 = vld [vmem:[%s1806_s0 + $0x1b8] sm:$0xf0]  ;;  %v1132_v13 = vld [vmem:[%s1806_s0 + $0x24] sm:$0xf]  ;;  %v1027_v16 = vor.u32 %v1166_v8, %v1024_v9 }
  0x46   : > { %731 = vmatpush.bf16.msrb.mxu2 %v1051_v6  ;;  %699 = vmatmul.bf16.vlgmr.msra.gmra.mxu3 %v1661_v52  ;;  %v255_v61 = vunpack.c.l.b16 %v247_v53  ;;  %v256_v62 = vunpack.c.h.b16 %v247_v53  ;;  %v1099_v6 = vor.u32 %v1184_v59, %v1096_v60  ;;  %v1182_v11 = vld [vmem:[%s1806_s0 + $0x1b4] sm:$0xf]  ;;  %v888_v14 = vld [vmem:[%s1806_s0 + $0x28] sm:$0xf0]  ;;  %v963_v15 = vor.u32 %v1150_v3, %v960_v7  ;;  %v1148_v17 = vld [vmem:[%s1806_s0 + $0xa4] sm:$0xf] }
  0x47   : > { %744 = vmatpush.bf16.msrb.mxu3 %v1115_v29  ;;  %686 = vmatmul.bf16.vlgmr.msra.gmra.mxu2 %v1659_v51  ;;  %v1091_v18 = vor.u32 %v1182_v11, %v1088_v12  ;;  %v952_v19 = vld [vmem:[%s1806_s0 + $0xa8] sm:$0xf0]  ;;  %v1164_v20 = vld [vmem:[%s1806_s0 + $0x124] sm:$0xf]  ;;  %v891_v22 = vor.u32 %v1132_v13, %v888_v14  ;;  %v1130_v25 = vld [vmem:[%s1806_s0 + $0x14] sm:$0xf] }
  0x48   : > { %706 = vmatpush.bf16.msrb.mxu0 %v915_v39  ;;  %v1689_v4 = vpack.c.b16 %v255_v61, %v255_v61  ;;  %v1691_v5 = vpack.c.b16 %v256_v62, %v256_v62  ;;  %v1016_v21 = vld [vmem:[%s1806_s0 + $0x128] sm:$0xf0]  ;;  %v1180_v23 = vld [vmem:[%s1806_s0 + $0x1a4] sm:$0xf]  ;;  %v880_v26 = vld [vmem:[%s1806_s0 + $0x18] sm:$0xf0]  ;;  %v955_v27 = vor.u32 %v1148_v17, %v952_v19 }
  0x49   : > { %719 = vmatpush.bf16.msrb.mxu1 %v979_v48  ;;  %v1080_v24 = vld [vmem:[%s1806_s0 + $0x1a8] sm:$0xf0]  ;;  %v1019_v28 = vor.u32 %v1164_v20, %v1016_v21  ;;  %v1146_v29 = vld [vmem:[%s1806_s0 + $0x94] sm:$0xf]  ;;  %v944_v31 = vld [vmem:[%s1806_s0 + $0x98] sm:$0xf0]  ;;  %v883_v34 = vor.u32 %v1130_v25, %v880_v26 }
  0x4a   : > { %732 = vmatpush.bf16.msrb.mxu2 %v1043_v49  ;;  %660 = vmatmul.bf16.vlgmr.msra.gmra.mxu0 %v1689_v4  ;;  %v1083_v30 = vor.u32 %v1180_v23, %v1080_v24  ;;  %v1162_v32 = vld [vmem:[%s1806_s0 + $0x114] sm:$0xf]  ;;  %v1008_v33 = vld [vmem:[%s1806_s0 + $0x118] sm:$0xf0]  ;;  %v1128_v37 = vld [vmem:[%s1806_s0 + $0x4] sm:$0xf]  ;;  %v947_v39 = vor.u32 %v1146_v29, %v944_v31 }
  0x4b   : > { %745 = vmatpush.bf16.msrb.mxu3 %v1107_v54  ;;  %673 = vmatmul.bf16.vlgmr.msra.gmra.mxu1 %v1691_v5  ;;  %v1178_v35 = vld [vmem:[%s1806_s0 + $0x194] sm:$0xf]  ;;  %v1072_v36 = vld [vmem:[%s1806_s0 + $0x198] sm:$0xf0]  ;;  %v872_v38 = vld [vmem:[%s1806_s0 + $0x8] sm:$0xf0]  ;;  %v1011_v40 = vor.u32 %v1162_v32, %v1008_v33 }
  0x4c   : > { %707 = vmatpush.bf16.msrb.mxu0 %v907_v58  ;;  %v1144_v41 = vld [vmem:[%s1806_s0 + $0x84] sm:$0xf]  ;;  %v1075_v42 = vor.u32 %v1178_v35, %v1072_v36  ;;  %v936_v43 = vld [vmem:[%s1806_s0 + $0x88] sm:$0xf0]  ;;  %v875_v47 = vor.u32 %v1128_v37, %v872_v38 }
  0x4d   : > { %720 = vmatpush.bf16.msrb.mxu1 %v971_v1  ;;  %v1160_v44 = vld [vmem:[%s1806_s0 + $0x104] sm:$0xf]  ;;  %v1000_v46 = vld [vmem:[%s1806_s0 + $0x108] sm:$0xf0]  ;;  %v939_v50 = vor.u32 %v1144_v41, %v936_v43 }
  0x4e   : > { %733 = vmatpush.bf16.msrb.mxu2 %v1035_v2  ;;  %v1176_v48 = vld [vmem:[%s1806_s0 + $0x184] sm:$0xf]  ;;  %v1064_v49 = vld [vmem:[%s1806_s0 + $0x188] sm:$0xf0]  ;;  %v1003_v53 = vor.u32 %v1160_v44, %v1000_v46 }
  0x4f   : > { %746 = vmatpush.bf16.msrb.mxu3 %v1099_v6  ;;  %v1067_v54 = vor.u32 %v1176_v48, %v1064_v49 }
  0x50   : > { %708 = vmatpush.bf16.msrb.mxu0 %v899_v10 }
  0x51   : > { %721 = vmatpush.bf16.msrb.mxu1 %v963_v15 }
  0x52   : > { %734 = vmatpush.bf16.msrb.mxu2 %v1027_v16 }
  0x53   : > { %747 = vmatpush.bf16.msrb.mxu3 %v1091_v18 }
  0x54   : > { %709 = vmatpush.bf16.msrb.mxu0 %v891_v22 }
  0x55   : > { %722 = vmatpush.bf16.msrb.mxu1 %v955_v27 }
  0x56   : > { %735 = vmatpush.bf16.msrb.mxu2 %v1019_v28 }
  0x57   : > { %748 = vmatpush.bf16.msrb.mxu3 %v1083_v30 }
  0x58   : > { %710 = vmatpush.bf16.msrb.mxu0 %v883_v34 }
  0x59   : > { %723 = vmatpush.bf16.msrb.mxu1 %v947_v39 }
  0x5a   : > { %736 = vmatpush.bf16.msrb.mxu2 %v1011_v40 }
  0x5b   : > { %749 = vmatpush.bf16.msrb.mxu3 %v1075_v42 }
  0x5c   : > { %711 = vmatpush.bf16.msrb.mxu0 %v875_v47 }
  0x5d   : > { %724 = vmatpush.bf16.msrb.mxu1 %v939_v50 }
  0x5e   : > { %737 = vmatpush.bf16.msrb.mxu2 %v1003_v53 }
  0x5f   : > { %750 = vmatpush.bf16.msrb.mxu3 %v1067_v54  ;;  %712 = vmatmul.bf16.vlgmr.msrb.gmra.mxu0 %v1689_v4 }
  0x60   : > { %725 = vmatmul.bf16.vlgmr.msrb.gmra.mxu1 %v1691_v5 }
  0x61   : > { %738 = vmatmul.bf16.vlgmr.msrb.gmra.mxu2 %v1659_v51 }
  0x62   : > { %751 = vmatmul.bf16.vlgmr.msrb.gmra.mxu3 %v1661_v52 }
  0xc7   : > { %v661_v55 = vpop.f32.mrf.mxu0 }
  0xc8   : > { %v674_v56 = vpop.f32.mrf.mxu1 }
  0xc9   : > { %v700_v58 = vpop.f32.mrf.mxu3  ;;  %v675_v59 = vadd.f32 %v674_v56, %v661_v55 }
  0xca   : > { %v687_v57 = vpop.f32.mrf.mxu2 }
  0xcb   : > { %v688_v60 = vadd.f32 %v687_v57, %v675_v59 }
  0xcd   : > { %v701_v1 = vadd.f32 %v700_v58, %v688_v60 }
  0xcf   : > { %v663_v61 = vpop.f32.mrf.mxu0  ;;  %v1124_v2 = vmul.f32 -1.442695, %v701_v1 }
  0xd0   : > { %v676_v62 = vpop.f32.mrf.mxu1 }
  0xd1   : > { %v702_v0 = vpop.f32.mrf.mxu3  ;;  %1216 = vpow2.f32 %v1124_v2 }
  0xd2   : > { %v689_v63 = vpop.f32.mrf.mxu2 }
  0xd7   : > { %v1217_v6 = vpop.eup %1216 }
  0xd8   : > { %v762_v9 = vadd.f32 1.0, %v1217_v6 }
  0xda   : > { %1218 = vrcp.f32 %v762_v9  ;;  %vm769_vm2 = vweird.f32 %v762_v9  ;;  %v773_v24 = vand.u32 2147483647, %v762_v9  ;;  %v775_v25 = vand.u32 2147483648, %v762_v9 }
  0xdc   : > { %v713_v3 = vpop.f32.mrf.mxu0  ;;  %v776_v31 = vor.u32 1.1754944e-38, %v775_v25  ;;  %vm774_vm8 = vcmp.eq.f32.partialorder %v773_v24, 8.507059e+37 }
  0xdd   : > { %v726_v4 = vpop.f32.mrf.mxu1 }
  0xde   : > { %v727_v5 = vadd.f32 %v726_v4, %v713_v3 }
  0xe0   : > { %v1219_v15 = vpop.eup %1218 }
  0xe1   : > { %v765_v18 = vmul.f32 %v1219_v15, %v762_v9  ;;  %vm770_vm3 = vweird.f32 %v1219_v15 }
  0xe2   : > { %vm771_vm5 = vmor %vm769_vm2, %vm770_vm3 }
  0xe3   : > { %v766_v19 = vsub.f32 1.0, %v765_v18 }
  0xe4   : > { %v739_v51 = vpop.f32.mrf.mxu2  ;;  %v715_v7 = vpop.f32.mrf.mxu0 }
  0xe5   : > { %v740_v52 = vadd.f32 %v739_v51, %v727_v5  ;;  %v752_v8 = vpop.f32.mrf.mxu3  ;;  %v728_v10 = vpop.f32.mrf.mxu1  ;;  %v767_v21 = vmul.f32 %v1219_v15, %v766_v19 }
  0xe7   : > { %v753_v11 = vadd.f32 %v752_v8, %v740_v52  ;;  %v768_v27 = vadd.f32 %v1219_v15, %v767_v21 }
  0xe9   : > { %v1125_v12 = vmul.f32 -1.442695, %v753_v11  ;;  %v772_v33 = vsel %vm771_vm5, %v1219_v15, %v768_v27 }
  0xea   : > { %v777_v37 = vsel %vm774_vm8, %v776_v31, %v772_v33 }
  0xeb   : > { %1220 = vpow2.f32 %v1125_v12 }
  0xec   : > { %v741_v13 = vpop.f32.mrf.mxu2 }
  0xed   : > { %v754_v14 = vpop.f32.mrf.mxu3 }
  0xf1   : > { %v1221_v16 = vpop.eup %1220 }
  0xf2   : > { %v763_v17 = vadd.f32 1.0, %v1221_v16 }
  0xf4   : > { %1222 = vrcp.f32 %v763_v17  ;;  %v790_v26 = vand.u32 2147483648, %v763_v17  ;;  %v788_v29 = vand.u32 2147483647, %v763_v17  ;;  %vm784_vm6 = vweird.f32 %v763_v17 }
  0xf6   : > { %v791_v32 = vor.u32 1.1754944e-38, %v790_v26  ;;  %vm789_vm9 = vcmp.eq.f32.partialorder %v788_v29, 8.507059e+37 }
  0xfa   : > { %v1223_v20 = vpop.eup %1222 }
  0xfb   : > { %v780_v22 = vmul.f32 %v1223_v20, %v763_v17  ;;  %vm785_vm4 = vweird.f32 %v1223_v20 }
  0xfc   : > { %vm786_vm7 = vmor %vm784_vm6, %vm785_vm4 }
  0xfd   : > { %v781_v23 = vsub.f32 1.0, %v780_v22 }
  0xff   : > { %v782_v28 = vmul.f32 %v1223_v20, %v781_v23 }
 0x101   : > { %v783_v30 = vadd.f32 %v1223_v20, %v782_v28 }
 0x103   : > { %v787_v34 = vsel %vm786_vm7, %v1223_v20, %v783_v30 }
 0x104   : > { %v792_v35 = vsel %vm789_vm9, %v791_v32, %v787_v34 }
 0x105   : > { %v796_v36 = vrot.slane %v792_v35, 7 }
 0x107   : > { %v797_v38 = vsel %vm221_vm1, %v777_v37, %v796_v36 }
 0x108   : > { %799 = vst.msk [vmem:[%s196_s15] sm:$0x3] %vm1562_vm0, %v797_v38 }
 0x109 PF: > { %p9_p9 = scmp.ge.s32.totalorder %s1280_s13, 4   ;;  %s1811_s9 = smov %s1242_s10 }
 0x10a   : > { %s1812_s10 = smov %s1289_s16  ;;  %s1813_s11 = smov %s1280_s13 }
 0x10b   :  { %11 = sbr.rel (!%p9_p9) target bundleno = 2 (0x2), region = 104 }

</bundles_post_ra>
